<compile_context>
chip_gen: v7x
topology: tpu7x:2x2x1
jax: 0.10.0
libtpu: 0.0.40
codegen_flags: <defaults>
</compile_context>

<pallas_src>
import jax
import jax.numpy as jnp
import numpy as np
from jax import lax
from jax.experimental import pallas as pl
from jax.experimental.pallas import tpu as pltpu

MXU_DTYPE = jnp.bfloat16   # matmul operand dtype for the conv path (acc = f32)


# ---------------------------------------------------------------------------
# One-time weight prepacking (hoisted out of the per-call jitted path).
# ---------------------------------------------------------------------------
def _banded_3x3(w, W):
    """(3,3,Cin,Cout) conv weight -> (3, W*Cin, W*Cout) stacked row-blocks.

    Row-block dy holds kernel row dy with its three horizontal taps placed on
    the (dx-1)-th block diagonal, so a SAME 3x3 conv of an (H, W*Cin) plane is
        out[h] = sum_dy  xpad[h+dy] @ band[dy]          (xpad = H-zero-padded)
    Zero padding along W is handled implicitly by the band structure.
    """
    KH, KW, Cin, Cout = w.shape
    blocks = []
    for dy in range(KH):
        blk = jnp.zeros((W * Cin, W * Cout), w.dtype)
        for dx in range(KW):
            blk = blk + jnp.kron(jnp.eye(W, k=1 - dx, dtype=w.dtype), w[dy, dx])
        blocks.append(blk)
    return jnp.stack(blocks, axis=0)


def _blockdiag_1x1(w, W):
    """(Cin, Cout) 1x1-conv weight -> (W*Cin, W*Cout) block-diagonal matrix."""
    return jnp.kron(jnp.eye(W, dtype=w.dtype), w)


def rspa_prepack(params, W):
    """Pack weights once per weight update; do NOT re-run per forward call."""
    w1, b1, w2, b2, w3, b3, wa1, ba1, wa2, ba2 = params
    C = w1.shape[-1]
    wb1 = _banded_3x3(w1, W).astype(MXU_DTYPE)                # (3, WC, WC)
    wb2 = _banded_3x3(w2, W).astype(MXU_DTYPE)                # (3, WC, WC)
    w3a = _blockdiag_1x1(w3[:C], W).astype(MXU_DTYPE)         # multiplies x3
    w3b = _blockdiag_1x1(w3[C:2 * C], W).astype(MXU_DTYPE)    # multiplies x2
    w3c = _blockdiag_1x1(w3[2 * C:], W).astype(MXU_DTYPE)     # multiplies x
    wa1b = _blockdiag_1x1(wa1, W)                             # f32 (WC, W*Cr)
    wa2b = _blockdiag_1x1(wa2, W)                             # f32 (W*Cr, WC)
    # Bias rows in the (W*C) layout, built once.
    b1r = jnp.tile(b1, (1, W))
    b2r = jnp.tile(b2, (1, W))
    b3r = jnp.tile(b3, (1, W))
    ba1r = jnp.tile(ba1, (1, W))
    ba2r = jnp.tile(ba2, (1, W))
    return (wb1, b1r, wb2, b2r, w3a, w3b, w3c, b3r, wa1b, ba1r, wa2b, ba2r)


# ---------------------------------------------------------------------------
# Kernel: one (B_blk, H, W*C) block per grid step; all matmuls have M = B_blk*H.
# ---------------------------------------------------------------------------
def rspa_kernel(x_ref, wb1_ref, b1_ref, wb2_ref, b2_ref,
                w3a_ref, w3b_ref, w3c_ref, b3_ref,
                wa1_ref, ba1_ref, wa2_ref, ba2_ref,
                o_ref, pad_ref):
    Bb, H, WC = x_ref.shape
    M = Bb * H

    # Per-batch halo rows of the padded scratch: zero them (2 rows per batch,
    # negligible).  Interior rows are rewritten by each conv; halos stay zero,
    # so zero-padding along H never mixes rows across batch planes.
    pad_ref[:, 0:1, :] = jnp.zeros((Bb, 1, WC), pad_ref.dtype)
    pad_ref[:, H + 1:H + 2, :] = jnp.zeros((Bb, 1, WC), pad_ref.dtype)

    # (H = multiple of 8 -> merging the batch dim into sublanes is layout-free)
    x = x_ref[...].reshape(M, WC)            # (M, WC) f32, kept for residual
    xb = x.astype(MXU_DTYPE)

    def conv3x3(p, wb_ref, b_row):
        # p: (M, WC) bf16.  Write the interior rows of the halo scratch, then
        # accumulate three MXU dots (K = WC each) against the three row-blocks
        # of the banded weight -- no pad / concat materializations.
        pad_ref[:, 1:H + 1, :] = p.reshape(Bb, H, WC)
        out = jnp.dot(pad_ref[:, 0:H, :].reshape(M, WC), wb_ref[0],
                      preferred_element_type=jnp.float32)
        out = out + jnp.dot(p, wb_ref[1],                      # unshifted slab
                            preferred_element_type=jnp.float32)
        out = out + jnp.dot(pad_ref[:, 2:H + 2, :].reshape(M, WC), wb_ref[2],
                            preferred_element_type=jnp.float32)
        return out + b_row

    # conv1 (3x3 SAME) + ReLU
    x2 = jnp.maximum(conv3x3(xb, wb1_ref, b1_ref[...]), 0.0)   # (M, WC) f32
    x2b = x2.astype(MXU_DTYPE)

    # conv2 (3x3 SAME)
    x3 = conv3x3(x2b, wb2_ref, b2_ref[...])
    x3b = x3.astype(MXU_DTYPE)

    # conv3 (1x1) over cat([x3, x2, x]) -- concat eliminated, w3 pre-split.
    y = (jnp.dot(x3b, w3a_ref[...], preferred_element_type=jnp.float32)
         + jnp.dot(x2b, w3b_ref[...], preferred_element_type=jnp.float32)
         + jnp.dot(xb, w3c_ref[...], preferred_element_type=jnp.float32)
         + b3_ref[...])

    # PALayer per-pixel gate: K/N = W*Cr = 16, so keep the tiny dots in f32
    # (no bf16 round-trip); sigmoid = 1 / (1 + exp(-a)) via EUP exp + approx
    # reciprocal (both off the VPU critical slots).
    a = jnp.dot(y, wa1_ref[...], preferred_element_type=jnp.float32) + ba1_ref[...]
    a = jnp.maximum(a, 0.0)
    a = jnp.dot(a, wa2_ref[...], preferred_element_type=jnp.float32) + ba2_ref[...]
    gate = pl.reciprocal(1.0 + jnp.exp(-a), approx=True)

    o_ref[...] = (y * gate + x).reshape(Bb, H, WC).astype(o_ref.dtype)


# ---------------------------------------------------------------------------
# Wrapper
# ---------------------------------------------------------------------------
def _pick_batch_block(B, H, WC):
    """Largest divisor of B that (a) keeps the x/out blocks within a modest
    VMEM budget and (b) keeps M = B_blk*H around a few hundred rows."""
    budget_bytes = 8 * 1024 * 1024                 # x + out, double-buffered
    cap_vmem = max(1, budget_bytes // (4 * H * WC * 4))
    cap_rows = max(1, -(-512 // H))                # M <= ~512 rows per step
    cap = min(cap_vmem, cap_rows)
    best = 1
    for cand in range(1, B + 1):
        if B % cand == 0 and cand <= cap:
            best = cand
    return best


def rspa_forward(x, packed):
    B, H, W, C = x.shape
    WC = W * C
    B_blk = _pick_batch_block(B, H, WC)
    x2d = x.reshape(B, H, WC)                      # lane-dense, layout-preserving

    def full_spec(arr):
        return pl.BlockSpec(arr.shape, lambda b, _nd=arr.ndim: (0,) * _nd)

    out2d = pl.pallas_call(
        rspa_kernel,
        out_shape=jax.ShapeDtypeStruct((B, H, WC), x.dtype),
        grid=(B // B_blk,),
        in_specs=[pl.BlockSpec((B_blk, H, WC), lambda b: (b, 0, 0))]
                 + [full_spec(p) for p in packed],
        out_specs=pl.BlockSpec((B_blk, H, WC), lambda b: (b, 0, 0)),
        scratch_shapes=[pltpu.VMEM((B_blk, H + 2, WC), MXU_DTYPE)],
        compiler_params=pltpu.CompilerParams(
            dimension_semantics=("parallel",),     # shards steps on v7x's 2 TCs
            vmem_limit_bytes=32 * 1024 * 1024),
    )(x2d, *packed)
    return out2d.reshape(B, H, W, C)


# ---------------------------------------------------------------------------
# Pure-JAX reference (NHWC), mirroring the PyTorch forward and the kernel's
# mixed-precision policy (bf16 conv/1x1-mix operands with f32 accumulation,
# f32 PALayer) so the check isolates structural correctness.
# ---------------------------------------------------------------------------
def rspa_reference(x, params):
    w1, b1, w2, b2, w3, b3, wa1, ba1, wa2, ba2 = params
    dn = ('NHWC', 'HWIO', 'NHWC')
    conv = lambda t, w: lax.conv_general_dilated(
        t.astype(MXU_DTYPE), w.astype(MXU_DTYPE), (1, 1), 'SAME',
        dimension_numbers=dn, preferred_element_type=jnp.float32)
    x2 = jax.nn.relu(conv(x, w1) + b1)
    x3 = conv(x2, w2) + b2
    cat = jnp.concatenate([x3, x2, x], axis=-1)
    y = jnp.einsum('bhwc,cd->bhwd', cat.astype(MXU_DTYPE), w3.astype(MXU_DTYPE),
                   preferred_element_type=jnp.float32) + b3
    a = jax.nn.relu(jnp.einsum('bhwc,cd->bhwd', y, wa1,
                               preferred_element_type=jnp.float32) + ba1)
    a = jax.nn.sigmoid(jnp.einsum('bhwc,cd->bhwd', a, wa2,
                                  preferred_element_type=jnp.float32) + ba2)
    return y * a + x


def init_params(key, n_feats):
    C = n_feats
    Cr = max(C // 8, 1)
    ks = jax.random.split(key, 10)
    s = 0.1
    w1 = jax.random.normal(ks[0], (3, 3, C, C), jnp.float32) * s
    b1 = jax.random.normal(ks[1], (1, C), jnp.float32) * s
    w2 = jax.random.normal(ks[2], (3, 3, C, C), jnp.float32) * s
    b2 = jax.random.normal(ks[3], (1, C), jnp.float32) * s
    w3 = jax.random.normal(ks[4], (3 * C, C), jnp.float32) * s      # 1x1 conv
    b3 = jax.random.normal(ks[5], (1, C), jnp.float32) * s
    wa1 = jax.random.normal(ks[6], (C, Cr), jnp.float32) * s        # PA 1x1
    ba1 = jax.random.normal(ks[7], (1, Cr), jnp.float32) * s
    wa2 = jax.random.normal(ks[8], (Cr, C), jnp.float32) * s        # PA 1x1
    ba2 = jax.random.normal(ks[9], (1, C), jnp.float32) * s
    return (w1, b1, w2, b2, w3, b3, wa1, ba1, wa2, ba2)


if __name__ == "__main__":
    key = jax.random.PRNGKey(0)
    kx, kp = jax.random.split(key)

    # W * n_feats = 128 -> fully lane-dense planes at this test shape.
    B, H, W, n_feats = 2, 16, 16, 8   # n_feats >= 8 required by PALayer(.., 8)
    x = jax.random.normal(kx, (B, H, W, n_feats), jnp.float32)
    params = init_params(kp, n_feats)

    packed = rspa_prepack(params, W)           # one-time weight packing
    out = jax.block_until_ready(jax.jit(rspa_forward)(x, packed))
    ref = jax.block_until_ready(rspa_reference(x, params))

    np.testing.assert_allclose(np.asarray(out), np.asarray(ref),
                               rtol=5e-3, atol=5e-3)
    print("KERNEL_OK")
</pallas_src>

<mosaic_0001>
module attributes {stable_mosaic.version = 11 : i64} {
  func.func @rspa_kernel(%arg0: i32, %arg1: memref<2x16x128xf32, #tpu.memory_space<vmem>>, %arg2: memref<3x128x128xbf16, #tpu.memory_space<vmem>>, %arg3: memref<1x128xf32, #tpu.memory_space<vmem>>, %arg4: memref<3x128x128xbf16, #tpu.memory_space<vmem>>, %arg5: memref<1x128xf32, #tpu.memory_space<vmem>>, %arg6: memref<128x128xbf16, #tpu.memory_space<vmem>>, %arg7: memref<128x128xbf16, #tpu.memory_space<vmem>>, %arg8: memref<128x128xbf16, #tpu.memory_space<vmem>>, %arg9: memref<1x128xf32, #tpu.memory_space<vmem>>, %arg10: memref<128x16xf32, #tpu.memory_space<vmem>>, %arg11: memref<1x16xf32, #tpu.memory_space<vmem>>, %arg12: memref<16x128xf32, #tpu.memory_space<vmem>>, %arg13: memref<1x128xf32, #tpu.memory_space<vmem>>, %arg14: memref<2x16x128xf32, #tpu.memory_space<vmem>>, %arg15: memref<2x18x128xbf16, #tpu.memory_space<vmem>>) attributes {dimension_semantics = [#tpu.dimension_semantics<parallel>], iteration_bounds = array<i64: 1>, scalar_prefetch = 0 : i64, scratch_operands = 1 : i64, tpu.core_type = #tpu.core_type<tc>, window_params = [{transform_indices = @transform_0, window_bounds = array<i64: 2, 16, 128>}, {pipeline_mode = #tpu.pipeline_mode<synchronous>, transform_indices = @transform_1, window_bounds = array<i64: 3, 128, 128>}, {pipeline_mode = #tpu.pipeline_mode<synchronous>, transform_indices = @transform_2, window_bounds = array<i64: 1, 128>}, {pipeline_mode = #tpu.pipeline_mode<synchronous>, transform_indices = @transform_3, window_bounds = array<i64: 3, 128, 128>}, {pipeline_mode = #tpu.pipeline_mode<synchronous>, transform_indices = @transform_4, window_bounds = array<i64: 1, 128>}, {pipeline_mode = #tpu.pipeline_mode<synchronous>, transform_indices = @transform_5, window_bounds = array<i64: 128, 128>}, {pipeline_mode = #tpu.pipeline_mode<synchronous>, transform_indices = @transform_6, window_bounds = array<i64: 128, 128>}, {pipeline_mode = #tpu.pipeline_mode<synchronous>, transform_indices = @transform_7, window_bounds = array<i64: 128, 128>}, {pipeline_mode = #tpu.pipeline_mode<synchronous>, transform_indices = @transform_8, window_bounds = array<i64: 1, 128>}, {pipeline_mode = #tpu.pipeline_mode<synchronous>, transform_indices = @transform_9, window_bounds = array<i64: 128, 16>}, {pipeline_mode = #tpu.pipeline_mode<synchronous>, transform_indices = @transform_10, window_bounds = array<i64: 1, 16>}, {pipeline_mode = #tpu.pipeline_mode<synchronous>, transform_indices = @transform_11, window_bounds = array<i64: 16, 128>}, {pipeline_mode = #tpu.pipeline_mode<synchronous>, transform_indices = @transform_12, window_bounds = array<i64: 1, 128>}, {transform_indices = @transform_13, window_bounds = array<i64: 2, 16, 128>}]} {
    %cst = arith.constant 0.000000e+00 : bf16
    %0 = vector.broadcast %cst : bf16 to vector<2x1x128xbf16>
    %c0 = arith.constant 0 : index
    %c0_0 = arith.constant 0 : index
    %c0_1 = arith.constant 0 : index
    %1 = vector.load %arg15[%c0, %c0_0, %c0_1] : memref<2x18x128xbf16, #tpu.memory_space<vmem>>, vector<2x1x128xbf16>
    tpu.vector_store %arg15[%c0, %c0_0, %c0_1], %0 {strides = array<i32>} : memref<2x18x128xbf16, #tpu.memory_space<vmem>>, vector<2x1x128xbf16>,
    %cst_2 = arith.constant 0.000000e+00 : bf16
    %2 = vector.broadcast %cst_2 : bf16 to vector<2x1x128xbf16>
    %c0_3 = arith.constant 0 : index
    %c17 = arith.constant 17 : index
    %c0_4 = arith.constant 0 : index
    %3 = vector.load %arg15[%c0_3, %c17, %c0_4] : memref<2x18x128xbf16, #tpu.memory_space<vmem>>, vector<2x1x128xbf16>
    tpu.vector_store %arg15[%c0_3, %c17, %c0_4], %2 {strides = array<i32>} : memref<2x18x128xbf16, #tpu.memory_space<vmem>>, vector<2x1x128xbf16>,
    %c0_5 = arith.constant 0 : index
    %c0_6 = arith.constant 0 : index
    %c0_7 = arith.constant 0 : index
    %4 = vector.load %arg1[%c0_5, %c0_6, %c0_7] : memref<2x16x128xf32, #tpu.memory_space<vmem>>, vector<2x16x128xf32>
    %5 = vector.shape_cast %4 : vector<2x16x128xf32> to vector<32x128xf32>
    %6 = arith.truncf %5 : vector<32x128xf32> to vector<32x128xbf16>
    %c0_8 = arith.constant 0 : index
    %c0_9 = arith.constant 0 : index
    %7 = vector.load %arg3[%c0_8, %c0_9] : memref<1x128xf32, #tpu.memory_space<vmem>>, vector<1x128xf32>
    %8 = vector.shape_cast %6 : vector<32x128xbf16> to vector<2x16x128xbf16>
    %c0_10 = arith.constant 0 : index
    %c1 = arith.constant 1 : index
    %c0_11 = arith.constant 0 : index
    %9 = vector.load %arg15[%c0_10, %c1, %c0_11] : memref<2x18x128xbf16, #tpu.memory_space<vmem>>, vector<2x16x128xbf16>
    tpu.vector_store %arg15[%c0_10, %c1, %c0_11], %8 {strides = array<i32>} : memref<2x18x128xbf16, #tpu.memory_space<vmem>>, vector<2x16x128xbf16>,
    %c0_12 = arith.constant 0 : index
    %c0_13 = arith.constant 0 : index
    %c0_14 = arith.constant 0 : index
    %10 = vector.load %arg15[%c0_12, %c0_13, %c0_14] : memref<2x18x128xbf16, #tpu.memory_space<vmem>>, vector<2x16x128xbf16>
    %11 = vector.shape_cast %10 : vector<2x16x128xbf16> to vector<32x128xbf16>
    %c0_15 = arith.constant 0 : index
    %c0_16 = arith.constant 0 : index
    %c0_17 = arith.constant 0 : index
    %12 = vector.load %arg2[%c0_15, %c0_16, %c0_17] : memref<3x128x128xbf16, #tpu.memory_space<vmem>>, vector<1x128x128xbf16>
    %13 = vector.shape_cast %12 : vector<1x128x128xbf16> to vector<128x128xbf16>
    %cst_18 = arith.constant dense<0.000000e+00> : vector<32x128xf32>
    %14 = tpu.matmul %11, %13, %cst_18 {dimension_numbers = #tpu.dot_dimension_numbers<[1], [0], [0], [1], [0, 0, 1, 1], [], []>} : vector<32x128xbf16>, vector<128x128xbf16>, vector<32x128xf32> -> vector<32x128xf32>
    %c1_19 = arith.constant 1 : index
    %c0_20 = arith.constant 0 : index
    %c0_21 = arith.constant 0 : index
    %15 = vector.load %arg2[%c1_19, %c0_20, %c0_21] : memref<3x128x128xbf16, #tpu.memory_space<vmem>>, vector<1x128x128xbf16>
    %16 = vector.shape_cast %15 : vector<1x128x128xbf16> to vector<128x128xbf16>
    %cst_22 = arith.constant dense<0.000000e+00> : vector<32x128xf32>
    %17 = tpu.matmul %6, %16, %cst_22 {dimension_numbers = #tpu.dot_dimension_numbers<[1], [0], [0], [1], [0, 0, 1, 1], [], []>} : vector<32x128xbf16>, vector<128x128xbf16>, vector<32x128xf32> -> vector<32x128xf32>
    %18 = arith.addf %14, %17 : vector<32x128xf32>
    %c0_23 = arith.constant 0 : index
    %c2 = arith.constant 2 : index
    %c0_24 = arith.constant 0 : index
    %19 = vector.load %arg15[%c0_23, %c2, %c0_24] : memref<2x18x128xbf16, #tpu.memory_space<vmem>>, vector<2x16x128xbf16>
    %20 = vector.shape_cast %19 : vector<2x16x128xbf16> to vector<32x128xbf16>
    %c2_25 = arith.constant 2 : index
    %c0_26 = arith.constant 0 : index
    %c0_27 = arith.constant 0 : index
    %21 = vector.load %arg2[%c2_25, %c0_26, %c0_27] : memref<3x128x128xbf16, #tpu.memory_space<vmem>>, vector<1x128x128xbf16>
    %22 = vector.shape_cast %21 : vector<1x128x128xbf16> to vector<128x128xbf16>
    %cst_28 = arith.constant dense<0.000000e+00> : vector<32x128xf32>
    %23 = tpu.matmul %20, %22, %cst_28 {dimension_numbers = #tpu.dot_dimension_numbers<[1], [0], [0], [1], [0, 0, 1, 1], [], []>} : vector<32x128xbf16>, vector<128x128xbf16>, vector<32x128xf32> -> vector<32x128xf32>
    %24 = arith.addf %18, %23 : vector<32x128xf32>
    %25 = vector.broadcast %7 : vector<1x128xf32> to vector<32x128xf32>
    %26 = arith.addf %24, %25 : vector<32x128xf32>
    %cst_29 = arith.constant 0.000000e+00 : f32
    %27 = vector.broadcast %cst_29 : f32 to vector<32x128xf32>
    %28 = arith.maximumf %26, %27 : vector<32x128xf32>
    %29 = arith.truncf %28 : vector<32x128xf32> to vector<32x128xbf16>
    %c0_30 = arith.constant 0 : index
    %c0_31 = arith.constant 0 : index
    %30 = vector.load %arg5[%c0_30, %c0_31] : memref<1x128xf32, #tpu.memory_space<vmem>>, vector<1x128xf32>
    %31 = vector.shape_cast %29 : vector<32x128xbf16> to vector<2x16x128xbf16>
    %c0_32 = arith.constant 0 : index
    %c1_33 = arith.constant 1 : index
    %c0_34 = arith.constant 0 : index
    %32 = vector.load %arg15[%c0_32, %c1_33, %c0_34] : memref<2x18x128xbf16, #tpu.memory_space<vmem>>, vector<2x16x128xbf16>
    tpu.vector_store %arg15[%c0_32, %c1_33, %c0_34], %31 {strides = array<i32>} : memref<2x18x128xbf16, #tpu.memory_space<vmem>>, vector<2x16x128xbf16>,
    %c0_35 = arith.constant 0 : index
    %c0_36 = arith.constant 0 : index
    %c0_37 = arith.constant 0 : index
    %33 = vector.load %arg15[%c0_35, %c0_36, %c0_37] : memref<2x18x128xbf16, #tpu.memory_space<vmem>>, vector<2x16x128xbf16>
    %34 = vector.shape_cast %33 : vector<2x16x128xbf16> to vector<32x128xbf16>
    %c0_38 = arith.constant 0 : index
    %c0_39 = arith.constant 0 : index
    %c0_40 = arith.constant 0 : index
    %35 = vector.load %arg4[%c0_38, %c0_39, %c0_40] : memref<3x128x128xbf16, #tpu.memory_space<vmem>>, vector<1x128x128xbf16>
    %36 = vector.shape_cast %35 : vector<1x128x128xbf16> to vector<128x128xbf16>
    %cst_41 = arith.constant dense<0.000000e+00> : vector<32x128xf32>
    %37 = tpu.matmul %34, %36, %cst_41 {dimension_numbers = #tpu.dot_dimension_numbers<[1], [0], [0], [1], [0, 0, 1, 1], [], []>} : vector<32x128xbf16>, vector<128x128xbf16>, vector<32x128xf32> -> vector<32x128xf32>
    %c1_42 = arith.constant 1 : index
    %c0_43 = arith.constant 0 : index
    %c0_44 = arith.constant 0 : index
    %38 = vector.load %arg4[%c1_42, %c0_43, %c0_44] : memref<3x128x128xbf16, #tpu.memory_space<vmem>>, vector<1x128x128xbf16>
    %39 = vector.shape_cast %38 : vector<1x128x128xbf16> to vector<128x128xbf16>
    %cst_45 = arith.constant dense<0.000000e+00> : vector<32x128xf32>
    %40 = tpu.matmul %29, %39, %cst_45 {dimension_numbers = #tpu.dot_dimension_numbers<[1], [0], [0], [1], [0, 0, 1, 1], [], []>} : vector<32x128xbf16>, vector<128x128xbf16>, vector<32x128xf32> -> vector<32x128xf32>
    %41 = arith.addf %37, %40 : vector<32x128xf32>
    %c0_46 = arith.constant 0 : index
    %c2_47 = arith.constant 2 : index
    %c0_48 = arith.constant 0 : index
    %42 = vector.load %arg15[%c0_46, %c2_47, %c0_48] : memref<2x18x128xbf16, #tpu.memory_space<vmem>>, vector<2x16x128xbf16>
    %43 = vector.shape_cast %42 : vector<2x16x128xbf16> to vector<32x128xbf16>
    %c2_49 = arith.constant 2 : index
    %c0_50 = arith.constant 0 : index
    %c0_51 = arith.constant 0 : index
    %44 = vector.load %arg4[%c2_49, %c0_50, %c0_51] : memref<3x128x128xbf16, #tpu.memory_space<vmem>>, vector<1x128x128xbf16>
    %45 = vector.shape_cast %44 : vector<1x128x128xbf16> to vector<128x128xbf16>
    %cst_52 = arith.constant dense<0.000000e+00> : vector<32x128xf32>
    %46 = tpu.matmul %43, %45, %cst_52 {dimension_numbers = #tpu.dot_dimension_numbers<[1], [0], [0], [1], [0, 0, 1, 1], [], []>} : vector<32x128xbf16>, vector<128x128xbf16>, vector<32x128xf32> -> vector<32x128xf32>
    %47 = arith.addf %41, %46 : vector<32x128xf32>
    %48 = vector.broadcast %30 : vector<1x128xf32> to vector<32x128xf32>
    %49 = arith.addf %47, %48 : vector<32x128xf32>
    %50 = arith.truncf %49 : vector<32x128xf32> to vector<32x128xbf16>
    %c0_53 = arith.constant 0 : index
    %c0_54 = arith.constant 0 : index
    %51 = vector.load %arg6[%c0_53, %c0_54] : memref<128x128xbf16, #tpu.memory_space<vmem>>, vector<128x128xbf16>
    %cst_55 = arith.constant dense<0.000000e+00> : vector<32x128xf32>
    %52 = tpu.matmul %50, %51, %cst_55 {dimension_numbers = #tpu.dot_dimension_numbers<[1], [0], [0], [1], [0, 0, 1, 1], [], []>} : vector<32x128xbf16>, vector<128x128xbf16>, vector<32x128xf32> -> vector<32x128xf32>
    %c0_56 = arith.constant 0 : index
    %c0_57 = arith.constant 0 : index
    %53 = vector.load %arg7[%c0_56, %c0_57] : memref<128x128xbf16, #tpu.memory_space<vmem>>, vector<128x128xbf16>
    %cst_58 = arith.constant dense<0.000000e+00> : vector<32x128xf32>
    %54 = tpu.matmul %29, %53, %cst_58 {dimension_numbers = #tpu.dot_dimension_numbers<[1], [0], [0], [1], [0, 0, 1, 1], [], []>} : vector<32x128xbf16>, vector<128x128xbf16>, vector<32x128xf32> -> vector<32x128xf32>
    %55 = arith.addf %52, %54 : vector<32x128xf32>
    %c0_59 = arith.constant 0 : index
    %c0_60 = arith.constant 0 : index
    %56 = vector.load %arg8[%c0_59, %c0_60] : memref<128x128xbf16, #tpu.memory_space<vmem>>, vector<128x128xbf16>
    %cst_61 = arith.constant dense<0.000000e+00> : vector<32x128xf32>
    %57 = tpu.matmul %6, %56, %cst_61 {dimension_numbers = #tpu.dot_dimension_numbers<[1], [0], [0], [1], [0, 0, 1, 1], [], []>} : vector<32x128xbf16>, vector<128x128xbf16>, vector<32x128xf32> -> vector<32x128xf32>
    %58 = arith.addf %55, %57 : vector<32x128xf32>
    %c0_62 = arith.constant 0 : index
    %c0_63 = arith.constant 0 : index
    %59 = vector.load %arg9[%c0_62, %c0_63] : memref<1x128xf32, #tpu.memory_space<vmem>>, vector<1x128xf32>
    %60 = vector.broadcast %59 : vector<1x128xf32> to vector<32x128xf32>
    %61 = arith.addf %58, %60 : vector<32x128xf32>
    %c0_64 = arith.constant 0 : index
    %c0_65 = arith.constant 0 : index
    %62 = vector.load %arg10[%c0_64, %c0_65] : memref<128x16xf32, #tpu.memory_space<vmem>>, vector<128x16xf32>
    %cst_66 = arith.constant dense<0.000000e+00> : vector<32x16xf32>
    %63 = tpu.matmul %61, %62, %cst_66 {dimension_numbers = #tpu.dot_dimension_numbers<[1], [0], [0], [1], [0, 0, 1, 1], [], []>} : vector<32x128xf32>, vector<128x16xf32>, vector<32x16xf32> -> vector<32x16xf32>
    %c0_67 = arith.constant 0 : index
    %c0_68 = arith.constant 0 : index
    %64 = vector.load %arg11[%c0_67, %c0_68] : memref<1x16xf32, #tpu.memory_space<vmem>>, vector<1x16xf32>
    %65 = vector.broadcast %64 : vector<1x16xf32> to vector<32x16xf32>
    %66 = arith.addf %63, %65 : vector<32x16xf32>
    %cst_69 = arith.constant 0.000000e+00 : f32
    %67 = vector.broadcast %cst_69 : f32 to vector<32x16xf32>
    %68 = arith.maximumf %66, %67 : vector<32x16xf32>
    %c0_70 = arith.constant 0 : index
    %c0_71 = arith.constant 0 : index
    %69 = vector.load %arg12[%c0_70, %c0_71] : memref<16x128xf32, #tpu.memory_space<vmem>>, vector<16x128xf32>
    %cst_72 = arith.constant dense<0.000000e+00> : vector<32x128xf32>
    %70 = tpu.matmul %68, %69, %cst_72 {dimension_numbers = #tpu.dot_dimension_numbers<[1], [0], [0], [1], [0, 0, 1, 1], [], []>} : vector<32x16xf32>, vector<16x128xf32>, vector<32x128xf32> -> vector<32x128xf32>
    %c0_73 = arith.constant 0 : index
    %c0_74 = arith.constant 0 : index
    %71 = vector.load %arg13[%c0_73, %c0_74] : memref<1x128xf32, #tpu.memory_space<vmem>>, vector<1x128xf32>
    %72 = vector.broadcast %71 : vector<1x128xf32> to vector<32x128xf32>
    %73 = arith.addf %70, %72 : vector<32x128xf32>
    %cst_75 = arith.constant 0.000000e+00 : f32
    %74 = vector.broadcast %cst_75 : f32 to vector<32x128xf32>
    %75 = arith.subf %74, %73 : vector<32x128xf32>
    %76 = math.exp %75 : vector<32x128xf32>
    %cst_76 = arith.constant 1.000000e+00 : f32
    %77 = vector.broadcast %cst_76 : f32 to vector<32x128xf32>
    %78 = arith.addf %77, %76 : vector<32x128xf32>
    %79 = tpu.reciprocal %78 {approx = true} : vector<32x128xf32> -> vector<32x128xf32>
    %80 = arith.mulf %61, %79 : vector<32x128xf32>
    %81 = arith.addf %80, %5 : vector<32x128xf32>
    %82 = vector.shape_cast %81 : vector<32x128xf32> to vector<2x16x128xf32>
    %c0_77 = arith.constant 0 : index
    %c0_78 = arith.constant 0 : index
    %c0_79 = arith.constant 0 : index
    %83 = vector.load %arg14[%c0_77, %c0_78, %c0_79] : memref<2x16x128xf32, #tpu.memory_space<vmem>>, vector<2x16x128xf32>
    tpu.vector_store %arg14[%c0_77, %c0_78, %c0_79], %82 {strides = array<i32>} : memref<2x16x128xf32, #tpu.memory_space<vmem>>, vector<2x16x128xf32>,
    return
  }
  func.func @transform_0(%arg0: i32) -> (i32, i32, i32) {
    %c0_i32 = arith.constant 0 : i32
    %c0_i32_0 = arith.constant 0 : i32
    %c0_i32_1 = arith.constant 0 : i32
    return %arg0, %c0_i32, %c0_i32_0 : i32, i32, i32
  }
  func.func @transform_1(%arg0: i32) -> (i32, i32, i32) {
    %c0_i32 = arith.constant 0 : i32
    %c0_i32_0 = arith.constant 0 : i32
    %c0_i32_1 = arith.constant 0 : i32
    %c0_i32_2 = arith.constant 0 : i32
    return %c0_i32, %c0_i32_0, %c0_i32_1 : i32, i32, i32
  }
  func.func @transform_2(%arg0: i32) -> (i32, i32) {
    %c0_i32 = arith.constant 0 : i32
    %c0_i32_0 = arith.constant 0 : i32
    %c0_i32_1 = arith.constant 0 : i32
    return %c0_i32, %c0_i32_0 : i32, i32
  }
  func.func @transform_3(%arg0: i32) -> (i32, i32, i32) {
    %c0_i32 = arith.constant 0 : i32
    %c0_i32_0 = arith.constant 0 : i32
    %c0_i32_1 = arith.constant 0 : i32
    %c0_i32_2 = arith.constant 0 : i32
    return %c0_i32, %c0_i32_0, %c0_i32_1 : i32, i32, i32
  }
  func.func @transform_4(%arg0: i32) -> (i32, i32) {
    %c0_i32 = arith.constant 0 : i32
    %c0_i32_0 = arith.constant 0 : i32
    %c0_i32_1 = arith.constant 0 : i32
    return %c0_i32, %c0_i32_0 : i32, i32
  }
  func.func @transform_5(%arg0: i32) -> (i32, i32) {
    %c0_i32 = arith.constant 0 : i32
    %c0_i32_0 = arith.constant 0 : i32
    %c0_i32_1 = arith.constant 0 : i32
    return %c0_i32, %c0_i32_0 : i32, i32
  }
  func.func @transform_6(%arg0: i32) -> (i32, i32) {
    %c0_i32 = arith.constant 0 : i32
    %c0_i32_0 = arith.constant 0 : i32
    %c0_i32_1 = arith.constant 0 : i32
    return %c0_i32, %c0_i32_0 : i32, i32
  }
  func.func @transform_7(%arg0: i32) -> (i32, i32) {
    %c0_i32 = arith.constant 0 : i32
    %c0_i32_0 = arith.constant 0 : i32
    %c0_i32_1 = arith.constant 0 : i32
    return %c0_i32, %c0_i32_0 : i32, i32
  }
  func.func @transform_8(%arg0: i32) -> (i32, i32) {
    %c0_i32 = arith.constant 0 : i32
    %c0_i32_0 = arith.constant 0 : i32
    %c0_i32_1 = arith.constant 0 : i32
    return %c0_i32, %c0_i32_0 : i32, i32
  }
  func.func @transform_9(%arg0: i32) -> (i32, i32) {
    %c0_i32 = arith.constant 0 : i32
    %c0_i32_0 = arith.constant 0 : i32
    %c0_i32_1 = arith.constant 0 : i32
    return %c0_i32, %c0_i32_0 : i32, i32
  }
  func.func @transform_10(%arg0: i32) -> (i32, i32) {
    %c0_i32 = arith.constant 0 : i32
    %c0_i32_0 = arith.constant 0 : i32
    %c0_i32_1 = arith.constant 0 : i32
    return %c0_i32, %c0_i32_0 : i32, i32
  }
  func.func @transform_11(%arg0: i32) -> (i32, i32) {
    %c0_i32 = arith.constant 0 : i32
    %c0_i32_0 = arith.constant 0 : i32
    %c0_i32_1 = arith.constant 0 : i32
    return %c0_i32, %c0_i32_0 : i32, i32
  }
  func.func @transform_12(%arg0: i32) -> (i32, i32) {
    %c0_i32 = arith.constant 0 : i32
    %c0_i32_0 = arith.constant 0 : i32
    %c0_i32_1 = arith.constant 0 : i32
    return %c0_i32, %c0_i32_0 : i32, i32
  }
  func.func @transform_13(%arg0: i32) -> (i32, i32, i32) {
    %c0_i32 = arith.constant 0 : i32
    %c0_i32_0 = arith.constant 0 : i32
    %c0_i32_1 = arith.constant 0 : i32
    return %arg0, %c0_i32, %c0_i32_0 : i32, i32, i32
  }
}

</mosaic_0001>

<bundles_post_ra>
// kernel: rspa_forward.1
= control target key start
LH: loop header
LB: loop body
LE: loop exit
PB: predicated region body
PF: predicated region fallthrough
CT: control target
= control target key end

     0   :  { %vm45_vm0 = vcmask 1040384   ;;  %vm46_vm1 = vsmask.f32 256  ;;  %v48_v3 = vld [vmem:[#allocation2] sm:$0x1]  ;;  %vm121_vm6 = vcmask 1043456   ;;  %s2797_s1 = inlined_call_operand.vmem [shape: bf16[3,128,128], index: 1, kind: input, shape index: {}]   ;;  %s2798_s0 = inlined_call_operand.vmem [shape: f32[2,16,128], index: 0, kind: input, shape index: {}]   ;;  %s2799_s3 = inlined_call_operand.vmem [shape: bf16[3,128,128], index: 3, kind: input, shape index: {}]   ;;  %s2800_s6 = inlined_call_operand.vmem [shape: bf16[128,128], index: 6, kind: input, shape index: {}]   ;;  %s2801_s5 = inlined_call_operand.vmem [shape: bf16[128,128], index: 5, kind: input, shape index: {}]   ;;  %s2802_s2 = inlined_call_operand.vmem [shape: f32[1,128], index: 2, kind: input, shape index: {}]   ;;  %s2803_s7 = inlined_call_operand.vmem [shape: bf16[128,128], index: 7, kind: input, shape index: {}]   ;;  %s2804_s9 = inlined_call_operand.vmem [shape: f32[128,16], index: 9, kind: input, shape index: {}]   ;;  %s2805_s4 = inlined_call_operand.vmem [shape: f32[1,128], index: 4, kind: input, shape index: {}]   ;;  %s2806_s8 = inlined_call_operand.vmem [shape: f32[1,128], index: 8, kind: input, shape index: {}]   ;;  %s2807_s11 = inlined_call_operand.vmem [shape: f32[16,128], index: 11, kind: input, shape index: {}]   ;;  %s2808_s10 = inlined_call_operand.vmem [shape: f32[1,16], index: 10, kind: input, shape index: {}]   ;;  %s2809_s12 = inlined_call_operand.vmem [shape: f32[1,128], index: 12, kind: input, shape index: {}]   ;;  %s2810_s13 = inlined_call_operand.vmem [shape: f32[2,16,128], index: 13, kind: output, shape index: {}]  }
   0x1   :  { %v2211_v0 = vld [vmem:[%s2797_s1] sm:$0xff]   ;;  %v2212_v1 = vld [vmem:[%s2797_s1 + $0x8] sm:$0xff]   ;;  %v2213_v2 = vld [vmem:[%s2797_s1 + $0x10] sm:$0xff]   ;;  %vm54_vm3 = vsmask.f32 7938  ;;  %vm392_vm9 = vcmask 1042432  }
   0x2   :  { %1941 = vmatprep.subr.bf16.mxu0 %v2211_v0  ;;  %v2214_v4 = vld [vmem:[%s2797_s1 + $0x18] sm:$0xff]   ;;  %v2219_v5 = vld [vmem:[%s2797_s1 + $0x40] sm:$0xff]   ;;  %vm2393_vm2 = vmand %vm45_vm0, %vm46_vm1  ;;  %vm79_vm5 = vsmask.f32 4368  ;;  %vm393_vm10 = vcmask 1046532   ;;  %vm1498_vm12 = vcmask 130048  }
   0x3   :  { %1942 = vmatpush3.bf16.msra.mxu0 %v2211_v0  ;;  %v56_v7 = vld [vmem:[#allocation2 + $0x8] sm:$0x1]  ;;  %v59_v8 = vld [vmem:[#allocation2 + $0x14] sm:$0x1]  ;;  %1921 = vmatprep.subr.bf16.mxu1 %v2219_v5  ;;  %v49_v9 = vsel %vm2393_vm2, 0, %v48_v3  ;;  %vm55_vm4 = vmand %vm45_vm0, %vm54_vm3 }
   0x4   :  { %1943 = vmatprep.subr.bf16.mxu0 %v2212_v1  ;;  %v62_v10 = vld [vmem:[%s2798_s0] sm:$0xff]  ;;  %v63_v11 = vld [vmem:[%s2798_s0 + $0x8] sm:$0xff]  ;;  %1922 = vmatpush3.bf16.msra.mxu1 %v2219_v5  ;;  %50 = vst [vmem:[#allocation2] sm:$0x1] %v49_v9  ;;  %v57_v12 = vsel %vm55_vm4, 0, %v56_v7  ;;  %v60_v13 = vsel %vm55_vm4, 0, %v59_v8  ;;  %vm2424_vm7 = vmor %vm46_vm1, %vm79_vm5 }
   0x5   :  { %v1797_v14 = vpack.c.bf16 %v62_v10, %v62_v10  ;;  %v1798_v15 = vpack.c.bf16 %v63_v11, %v63_v11  ;;  %v2215_v16 = vld [vmem:[%s2797_s1 + $0x20] sm:$0xff]   ;;  %58 = vst [vmem:[#allocation2 + $0x8] sm:$0x1] %v57_v12  ;;  %61 = vst [vmem:[#allocation2 + $0x14] sm:$0x1] %v60_v13  ;;  %v2409_v17 = vpack.c.bf16 %v63_v11, %v62_v10  ;;  %v2216_v22 = vld [vmem:[%s2797_s1 + $0x28] sm:$0xff]  }
   0x6   :  { %v2222_v23 = vld [vmem:[%s2797_s1 + $0x48] sm:$0xff]   ;;  %v2420_v25 = vld [vmem:[%s2798_s0 + $0x10] sm:$0xff]  ;;  %v2433_v30 = vld [vmem:[%s2798_s0 + $0x18] sm:$0xff] }
   0x7   :  { %1944 = vmatpush3.bf16.msra.mxu0 %v2212_v1  ;;  %v82_v18 = vshrl.u32 %v1797_v14, 16  ;;  %v85_v19 = vshll.u32 %v1797_v14, 16  ;;  %v90_v20 = vshrl.u32 %v1798_v15, 16  ;;  %v93_v21 = vshll.u32 %v1798_v15, 16  ;;  %v51_v24 = vld [vmem:[#allocation2 + $0xc] sm:$0x1]  ;;  %1937 = vmatprep.mubr.bf16.mxu1 %v2409_v17  ;;  %vm2439_vm8 = vmand %vm121_vm6, %vm54_vm3 }
   0x8   :  { %1945 = vmatprep.subr.bf16.mxu0 %v2213_v2  ;;  %v52_v29 = vsel %vm2393_vm2, 0, %v51_v24  ;;  %v1799_v31 = vpack.c.bf16 %v2420_v25, %v2420_v25  ;;  %1923 = vmatprep.subr.bf16.mxu1 %v2222_v23  ;;  %v1800_v33 = vpack.c.bf16 %v2433_v30, %v2433_v30  ;;  %v2225_v38 = vld [vmem:[%s2797_s1 + $0x50] sm:$0xff]   ;;  %v2227_v51 = vld [vmem:[%s2797_s1 + $0x58] sm:$0xff]   ;;  %v2229_v55 = vld [vmem:[%s2797_s1 + $0x60] sm:$0xff]   ;;  %v2506_v24 = vpack.c.bf16 %v2433_v30, %v2420_v25 }
   0x9   :  { %v84_v27 = vrot.slane %v82_v18, 7  ;;  %v92_v28 = vrot.slane %v90_v20, 7  ;;  %53 = vst [vmem:[#allocation2 + $0xc] sm:$0x1] %v52_v29  ;;  %1924 = vmatpush3.bf16.msra.mxu1 %v2222_v23  ;;  %v2217_v39 = vld [vmem:[%s2797_s1 + $0x30] sm:$0xff]   ;;  %v2218_v57 = vld [vmem:[%s2797_s1 + $0x38] sm:$0xff]   ;;  %vm2476_vm11 = vmor %vm392_vm9, %vm393_vm10 }
   0xa   :  { %v99_v41 = vshrl.u32 %v1799_v31, 16  ;;  %v102_v42 = vshll.u32 %v1799_v31, 16  ;;  %v107_v43 = vshrl.u32 %v1800_v33, 16  ;;  %v110_v44 = vshll.u32 %v1800_v33, 16  ;;  %1925 = vmatprep.subr.bf16.mxu1 %v2225_v38  ;;  %v2231_v60 = vld [vmem:[%s2797_s1 + $0x68] sm:$0xff]   ;;  %v2221_v62 = vld [vmem:[%s2797_s1 + $0x80] sm:$0xff]  }
   0xb   :  { %1946 = vmatpush3.bf16.msra.mxu0 %v2213_v2  ;;  %v87_v34 = vor.u32 %v85_v19, %v84_v27  ;;  %v88_v35 = vrot.slane %v84_v27, 4  ;;  %v95_v36 = vor.u32 %v93_v21, %v92_v28  ;;  %v97_v37 = vrot.slane %v92_v28, 4  ;;  %v123_v40 = vld [vmem:[#allocation2] sm:$0xf]  ;;  %v2233_v1 = vld [vmem:[%s2797_s1 + $0x70] sm:$0xff]   ;;  %v2224_v2 = vld [vmem:[%s2797_s1 + $0x88] sm:$0xff]  }
   0xc   :  { %1947 = vmatprep.subr.bf16.mxu0 %v2214_v4  ;;  %v127_v47 = vld [vmem:[#allocation2 + $0x8] sm:$0x1]  ;;  %v101_v49 = vrot.slane %v99_v41, 7  ;;  %v109_v50 = vrot.slane %v107_v43, 7  ;;  %v134_v9 = vld [vmem:[#allocation2 + $0x14] sm:$0x1] }
   0xd   :  { %v96_v45 = vsel %vm2424_vm7, %v88_v35, %v95_v36  ;;  %v124_v46 = vsel %vm2439_vm8, %v87_v34, %v123_v40  ;;  %v128_v48 = vsel %vm2393_vm2, %v97_v37, %v127_v47  ;;  %1926 = vmatpush3.bf16.msra.mxu1 %v2225_v38  ;;  %v2235_v10 = vld [vmem:[%s2797_s1 + $0x78] sm:$0xff]   ;;  %v2226_v15 = vld [vmem:[%s2797_s1 + $0x90] sm:$0xff]   ;;  %v2237_v20 = vld [vmem:[%s2799_s3 + $0x40] sm:$0xff]  }
   0xe   :  { %125 = vst [vmem:[#allocation2] sm:$0xf] %v124_v46  ;;  %126 = vst [vmem:[#allocation2 + $0x4] sm:$0xf] %v96_v45  ;;  %v104_v52 = vor.u32 %v102_v42, %v101_v49  ;;  %v105_v53 = vrot.slane %v101_v49, 4  ;;  %v112_v54 = vor.u32 %v110_v44, %v109_v50  ;;  %1927 = vmatprep.subr.bf16.mxu1 %v2227_v51  ;;  %v114_v0 = vrot.slane %v109_v50, 4 }
   0xf   :  { %1948 = vmatpush3.bf16.msra.mxu0 %v2214_v4  ;;  %129 = vst [vmem:[#allocation2 + $0x8] sm:$0x1] %v128_v48  ;;  %v2228_v21 = vld [vmem:[%s2797_s1 + $0x98] sm:$0xff]   ;;  %v2230_v28 = vld [vmem:[%s2797_s1 + $0xa0] sm:$0xff]   ;;  %v2239_v31 = vld [vmem:[%s2799_s3 + $0x48] sm:$0xff]  }
  0x10   :  { %1949 = vmatprep.subr.bf16.mxu0 %v2215_v16  ;;  %v130_v56 = vld [vmem:[#allocation2 + $0xc] sm:$0xf]  ;;  %v113_v58 = vsel %vm2424_vm7, %v105_v53, %v112_v54  ;;  %v135_v13 = vsel %vm2393_vm2, %v114_v0, %v134_v9  ;;  %v2241_v30 = vld [vmem:[%s2799_s3 + $0x50] sm:$0xff]   ;;  %v2243_v36 = vld [vmem:[%s2799_s3 + $0x58] sm:$0xff]  }
  0x11   :  { %v131_v59 = vsel %vm2439_vm8, %v104_v52, %v130_v56  ;;  %133 = vst [vmem:[#allocation2 + $0x10] sm:$0xf] %v113_v58  ;;  %1928 = vmatpush3.bf16.msra.mxu1 %v2227_v51  ;;  %136 = vst [vmem:[#allocation2 + $0x14] sm:$0x1] %v135_v13  ;;  %v2232_v35 = vld [vmem:[%s2797_s1 + $0xa8] sm:$0xff]   ;;  %v2234_v37 = vld [vmem:[%s2797_s1 + $0xb0] sm:$0xff]  }
  0x12   :  { %132 = vst [vmem:[#allocation2 + $0xc] sm:$0xf] %v131_v59  ;;  %1929 = vmatprep.subr.bf16.mxu1 %v2229_v55  ;;  %v2245_v38 = vld [vmem:[%s2799_s3 + $0x60] sm:$0xff]   ;;  %v2240_v44 = vld [vmem:[%s2800_s6 + $0x8] sm:$0xff]   ;;  %v2242_v45 = vld [vmem:[%s2800_s6 + $0x10] sm:$0xff]  }
  0x13   :  { %1950 = vmatpush3.bf16.msra.mxu0 %v2215_v16  ;;  %v2238_v42 = vld [vmem:[%s2800_s6] sm:$0xff]   ;;  %v2244_v46 = vld [vmem:[%s2800_s6 + $0x18] sm:$0xff]   ;;  %v2247_v48 = vld [vmem:[%s2799_s3 + $0x68] sm:$0xff]  }
  0x14   :  { %1951 = vmatprep.subr.bf16.mxu0 %v2216_v22  ;;  %v2246_v47 = vld [vmem:[%s2800_s6 + $0x20] sm:$0xff]   ;;  %v2248_v49 = vld [vmem:[%s2800_s6 + $0x28] sm:$0xff]   ;;  %v2249_v50 = vld [vmem:[%s2799_s3 + $0x70] sm:$0xff]  }
  0x15   :  { %v2220_v61 = vld [vmem:[#allocation2] sm:$0xff]   ;;  %1930 = vmatpush3.bf16.msra.mxu1 %v2229_v55  ;;  %v2250_v51 = vld [vmem:[%s2800_s6 + $0x30] sm:$0xff]   ;;  %v2251_v52 = vld [vmem:[%s2799_s3 + $0x78] sm:$0xff]  }
  0x16   :  { %1957 = vmatprep.mubr.bf16.mxu0 %v2220_v61  ;;  %1931 = vmatprep.subr.bf16.mxu1 %v2231_v60  ;;  %v380_v3 = vld [vmem:[#allocation2] sm:$0xe]  ;;  %v381_v7 = vld [vmem:[#allocation2 + $0x4] sm:$0xf]  ;;  %v382_v8 = vld [vmem:[#allocation2 + $0x8] sm:$0x1] }
  0x17   :  { %1952 = vmatpush3.bf16.msra.mxu0 %v2216_v22  ;;  %v1670_v5 = vrot.slane %v380_v3, 9  ;;  %v397_v11 = vrot.slane %v381_v7, 5  ;;  %v400_v12 = vrot.slane %v382_v8, 5  ;;  %v2252_v53 = vld [vmem:[%s2800_s6 + $0x38] sm:$0xff]   ;;  %v2253_v54 = vld [vmem:[%s2799_s3] sm:$0xff]  }
  0x18   :  { %1953 = vmatprep.subr.bf16.mxu0 %v2217_v39  ;;  %v384_v14 = vld [vmem:[#allocation2 + $0x10] sm:$0xf]  ;;  %v385_v29 = vld [vmem:[#allocation2 + $0x14] sm:$0x1]  ;;  %v2271_v55 = vld [vmem:[%s2801_s5] sm:$0xff]  }
  0x19   :  { %v2223_v4 = vld [vmem:[#allocation2 + $0xc] sm:$0xff]   ;;  %1932 = vmatpush3.bf16.msra.mxu1 %v2231_v60  ;;  %v398_v16 = vsel %vm2476_vm11, %v1670_v5, %v397_v11  ;;  %v399_v18 = vrot.slane %v397_v11, 4  ;;  %v404_v23 = vrot.slane %v384_v14, 5  ;;  %v407_v25 = vrot.slane %v385_v29, 5  ;;  %v1698_v60 = vld [vmem:[%s2802_s2] ss:$0 sm:$0xff] }
  0x1a   :  { %1933 = vmatprep.subr.bf16.mxu1 %v2233_v1  ;;  %v383_v27 = vld [vmem:[#allocation2 + $0xc] sm:$0xe]  ;;  %v2256_v32 = vld [vmem:[%s2799_s3 + $0x18] sm:$0xff]   ;;  %v2257_v6 = vld [vmem:[%s2799_s3 + $0x20] sm:$0xff]  }
  0x1b   :  { %1954 = vmatpush3.bf16.msra.mxu0 %v2217_v39  ;;  %v401_v19 = vsel %vm2476_vm11, %v399_v18, %v400_v12  ;;  %v1671_v33 = vrot.slane %v383_v27, 9  ;;  %v406_v34 = vrot.slane %v404_v23, 4  ;;  %v2236_v39 = vld [vmem:[%s2797_s1 + $0xb8] sm:$0xff]   ;;  %v2275_v26 = vld [vmem:[%s2801_s5 + $0x20] sm:$0xff]  }
  0x1c   :  { %1955 = vmatprep.subr.bf16.mxu0 %v2218_v57  ;;  %v1688_v22 = vcombine.low %v398_v16, %v401_v19  ;;  %v1377_v63 = vld [vmem:[%s2804_s9] sm:$0xff] }
  0x1d   :  { %1934 = vmatpush3.bf16.msra.mxu1 %v2233_v1  ;;  %v405_v40 = vsel %vm2476_vm11, %v1671_v33, %v404_v23  ;;  %v408_v41 = vsel %vm2476_vm11, %v406_v34, %v407_v25  ;;  %v2272_v33 = vld [vmem:[%s2801_s5 + $0x8] sm:$0xff]  }
  0x1e   :  { %1935 = vmatprep.subr.bf16.mxu1 %v2235_v10  ;;  %v1689_v43 = vcombine.low %v405_v40, %v408_v41  ;;  %v609_v34 = vld [vmem:[#allocation2 + $0xc] sm:$0xf]  ;;  %v613_v41 = vld [vmem:[#allocation2 + $0x14] sm:$0x1] }
  0x1f   :  { %1956 = vmatpush3.bf16.msra.mxu0 %v2218_v57 }
  0x20   :  { %1961 = vmatprep.subr.bf16.mxu0 %v2221_v62 }
  0x21   :  { %1936 = vmatpush3.bf16.msra.mxu1 %v2235_v10 }
  0x22   :  { %1958 = vmatmul.mubr.bf16.vlgmr.msra.gmra.mrb[0].mxu0 %v2223_v4  ;;  %1981 = vmatprep.subr.bf16.mxu1 %v2237_v20 }
  0x23   :  { %1962 = vmatpush3.bf16.msra.mxu0 %v2221_v62  ;;  %1977 = vmatprep.mubr.bf16.mxu0 %v1688_v22 }
  0x24   :  { %1963 = vmatprep.subr.bf16.mxu0 %v2224_v2  ;;  %1938 = vmatmul.mubr.bf16.vlgmr.msra.gmra.mrb[0].mxu1 %v2506_v24 }
  0x25   :  { %1982 = vmatpush3.bf16.msra.mxu1 %v2237_v20 }
  0x26   :  { %1983 = vmatprep.subr.bf16.mxu1 %v2239_v31 }
  0x27   :  { %1964 = vmatpush3.bf16.msra.mxu0 %v2224_v2 }
  0x28   :  { %1965 = vmatprep.subr.bf16.mxu0 %v2226_v15 }
  0x29   :  { %1984 = vmatpush3.bf16.msra.mxu1 %v2239_v31  ;;  %v2254_v31 = vld [vmem:[%s2799_s3 + $0x8] sm:$0xff]  }
  0x2a   :  { %1985 = vmatprep.subr.bf16.mxu1 %v2241_v30 }
  0x2b   :  { %1966 = vmatpush3.bf16.msra.mxu0 %v2226_v15 }
  0x2c   :  { %1967 = vmatprep.subr.bf16.mxu0 %v2228_v21 }
  0x2d   :  { %1986 = vmatpush3.bf16.msra.mxu1 %v2241_v30 }
  0x2e   :  { %1987 = vmatprep.subr.bf16.mxu1 %v2243_v36 }
  0x2f   :  { %1968 = vmatpush3.bf16.msra.mxu0 %v2228_v21 }
  0x30   :  { %1969 = vmatprep.subr.bf16.mxu0 %v2230_v28 }
  0x31   :  { %1988 = vmatpush3.bf16.msra.mxu1 %v2243_v36 }
  0x32   :  { %1989 = vmatprep.subr.bf16.mxu1 %v2245_v38 }
  0x33   :  { %1970 = vmatpush3.bf16.msra.mxu0 %v2230_v28 }
  0x34   :  { %1971 = vmatprep.subr.bf16.mxu0 %v2232_v35 }
  0x35   :  { %1990 = vmatpush3.bf16.msra.mxu1 %v2245_v38 }
  0x36   :  { %1991 = vmatprep.subr.bf16.mxu1 %v2247_v48 }
  0x37   :  { %1972 = vmatpush3.bf16.msra.mxu0 %v2232_v35 }
  0x38   :  { %1973 = vmatprep.subr.bf16.mxu0 %v2234_v37 }
  0x39   :  { %1992 = vmatpush3.bf16.msra.mxu1 %v2247_v48  ;;  %v606_v48 = vld [vmem:[#allocation2 + $0x8] sm:$0x1] }
  0x3a   :  { %1993 = vmatprep.subr.bf16.mxu1 %v2249_v50 }
  0x3b   :  { %1974 = vmatpush3.bf16.msra.mxu0 %v2234_v37  ;;  %v602_v37 = vld [vmem:[#allocation2] sm:$0xf] }
  0x3c   :  { %1975 = vmatprep.subr.bf16.mxu0 %v2236_v39 }
  0x3d   :  { %1994 = vmatpush3.bf16.msra.mxu1 %v2249_v50  ;;  %v2273_v50 = vld [vmem:[%s2801_s5 + $0x10] sm:$0xff]  }
  0x3e   :  { %1995 = vmatprep.subr.bf16.mxu1 %v2251_v52 }
  0x3f   :  { %1976 = vmatpush3.bf16.msra.mxu0 %v2236_v39 }
  0x40   :  { %2041 = vmatprep.subr.bf16.mxu0 %v2238_v42 }
  0x41   :  { %1996 = vmatpush3.bf16.msra.mxu1 %v2251_v52 }
  0x42   :  { %1978 = vmatmul.mubr.bf16.vlgmr.msra.gmra.mrb[0].mxu0 %v1689_v43  ;;  %2001 = vmatprep.subr.bf16.mxu1 %v2253_v54 }
  0x43   :  { %2042 = vmatpush3.bf16.msra.mxu0 %v2238_v42 }
  0x44   :  { %2043 = vmatprep.subr.bf16.mxu0 %v2240_v44 }
  0x47   :  { %2044 = vmatpush3.bf16.msra.mxu0 %v2240_v44 }
  0x48   :  { %2045 = vmatprep.subr.bf16.mxu0 %v2242_v45 }
  0x4b   :  { %2046 = vmatpush3.bf16.msra.mxu0 %v2242_v45 }
  0x4c   :  { %2047 = vmatprep.subr.bf16.mxu0 %v2244_v46 }
  0x4f   :  { %2048 = vmatpush3.bf16.msra.mxu0 %v2244_v46 }
  0x50   :  { %2049 = vmatprep.subr.bf16.mxu0 %v2246_v47 }
  0x53   :  { %2050 = vmatpush3.bf16.msra.mxu0 %v2246_v47 }
  0x54   :  { %2051 = vmatprep.subr.bf16.mxu0 %v2248_v49 }
  0x57   :  { %2052 = vmatpush3.bf16.msra.mxu0 %v2248_v49  ;;  %v2255_v49 = vld [vmem:[%s2799_s3 + $0x10] sm:$0xff]  }
  0x58   :  { %2053 = vmatprep.subr.bf16.mxu0 %v2250_v51 }
  0x5b   :  { %2054 = vmatpush3.bf16.msra.mxu0 %v2250_v51 }
  0x5c   :  { %2055 = vmatprep.subr.bf16.mxu0 %v2252_v53 }
  0x5f   :  { %2056 = vmatpush3.bf16.msra.mxu0 %v2252_v53 }
  0x60   :  { %2061 = vmatprep.subr.bf16.mxu0 %v2271_v55 }
  0xf7   :  { %v1939_v56 = vpop.f32.mrb[0].mxu1 }
  0xf8   :  { %v256_v57 = vpop.f32.mrb[1].mxu1 }
  0xf9   :  { %v1940_v58 = vpop.f32.mrb[2].mxu1 }
  0xfa   :  { %v259_v59 = vpop.f32.mrb[3].mxu1 }
 0x115   :  { %v1979_v61 = vpop.f32.mrb[0].mxu0 }
 0x116   :  { %v2187_v62 = vadd.f32 %v1979_v61, %v1939_v56  ;;  %v516_v0 = vpop.f32.mrb[1].mxu0  ;;  %v2259_v61 = vld [vmem:[%s2799_s3 + $0x28] sm:$0xff]  }
 0x117   :  { %v2188_v1 = vadd.f32 %v516_v0, %v256_v57  ;;  %v1980_v2 = vpop.f32.mrb[2].mxu0 }
 0x118   :  { %v543_v3 = vadd.f32 %v2187_v62, %v1698_v60  ;;  %v2189_v4 = vadd.f32 %v1980_v2, %v1940_v58  ;;  %v519_v5 = vpop.f32.mrb[3].mxu0  ;;  %v2276_v62 = vld [vmem:[%s2801_s5 + $0x28] sm:$0xff]  }
 0x119   :  { %v541_v7 = vadd.f32 %v2188_v1, %v1698_v60  ;;  %v2190_v8 = vadd.f32 %v519_v5, %v259_v59  ;;  %v2274_v59 = vld [vmem:[%s2801_s5 + $0x18] sm:$0xff]   ;;  %v2260_v1 = vld [vmem:[%s2799_s3 + $0x30] sm:$0xff]  }
 0x11a   :  { %v547_v9 = vmax.f32 %v543_v3, 0.0  ;;  %v544_v10 = vadd.f32 %v2189_v4, %v1698_v60  ;;  %v2261_v3 = vld [vmem:[%s2799_s3 + $0x38] sm:$0xff]  }
 0x11b   :  { %v545_v11 = vmax.f32 %v541_v7, 0.0  ;;  %v542_v12 = vadd.f32 %v2190_v8, %v1698_v60  ;;  %v2263_v8 = vld [vmem:[%s2799_s3 + $0x80] sm:$0xff]  }
 0x11c   :  { %v1803_v13 = vpack.c.bf16 %v547_v9, %v547_v9  ;;  %v548_v14 = vmax.f32 %v544_v10, 0.0 }
 0x11d   :  { %v1801_v15 = vpack.c.bf16 %v545_v11, %v545_v11  ;;  %v546_v16 = vmax.f32 %v542_v12, 0.0 }
 0x11e   :  { %v580_v18 = vshrl.u32 %v1803_v13, 16  ;;  %v550_v19 = vpack.c.bf16 %v548_v14, %v547_v9  ;;  %v1804_v20 = vpack.c.bf16 %v548_v14, %v548_v14  ;;  %v583_v28 = vshll.u32 %v1803_v13, 16  ;;  %v2264_v14 = vld [vmem:[%s2799_s3 + $0x88] sm:$0xff]  }
 0x11f   :  { %v563_v21 = vshrl.u32 %v1801_v15, 16  ;;  %v1802_v22 = vpack.c.bf16 %v546_v16, %v546_v16  ;;  %v549_v23 = vpack.c.bf16 %v546_v16, %v545_v11  ;;  %v566_v30 = vshll.u32 %v1801_v15, 16  ;;  %v2265_v16 = vld [vmem:[%s2799_s3 + $0x90] sm:$0xff]  }
 0x120   :  { %v582_v27 = vrot.slane %v580_v18, 7  ;;  %v588_v29 = vshrl.u32 %v1804_v20, 16  ;;  %v591_v39 = vshll.u32 %v1804_v20, 16  ;;  %v2266_v18 = vld [vmem:[%s2799_s3 + $0x98] sm:$0xff]   ;;  %v2268_v20 = vld [vmem:[%s2799_s3 + $0xa8] sm:$0xff]  }
 0x121   :  { %v565_v25 = vrot.slane %v563_v21, 7  ;;  %v571_v35 = vshrl.u32 %v1802_v22, 16  ;;  %1997 = vmatprep.mubr.bf16.mxu1 %v549_v23  ;;  %2057 = vmatprep.mubr.bf16.mxu0 %v549_v23  ;;  %v574_v43 = vshll.u32 %v1802_v22, 16  ;;  %v2269_v22 = vld [vmem:[%s2799_s3 + $0xb0] sm:$0xff]  }
 0x122   :  { %v585_v36 = vor.u32 %v583_v28, %v582_v27  ;;  %v590_v38 = vrot.slane %v588_v29, 7  ;;  %1998 = vmatmul.mubr.bf16.vlgmr.msra.gmra.mrb[4].mxu1 %v550_v19  ;;  %2058 = vmatmul.mubr.bf16.vlgmr.msra.gmra.mrb[4].mxu0 %v550_v19  ;;  %v586_v44 = vrot.slane %v582_v27, 4  ;;  %v2267_v19 = vld [vmem:[%s2799_s3 + $0xa0] sm:$0xff]   ;;  %v2270_v27 = vld [vmem:[%s2799_s3 + $0xb8] sm:$0xff]  }
 0x123   :  { %v568_v40 = vor.u32 %v566_v30, %v565_v25  ;;  %v573_v42 = vrot.slane %v571_v35, 7  ;;  %2002 = vmatpush3.bf16.msra.mxu1 %v2253_v54  ;;  %2062 = vmatpush3.bf16.msra.mxu0 %v2271_v55  ;;  %v569_v51 = vrot.slane %v565_v25, 4 }
 0x124   :  { %v610_v45 = vsel %vm2439_vm8, %v585_v36, %v609_v34  ;;  %v593_v46 = vor.u32 %v591_v39, %v590_v38  ;;  %v595_v47 = vrot.slane %v590_v38, 4  ;;  %2003 = vmatprep.subr.bf16.mxu1 %v2254_v31  ;;  %2063 = vmatprep.subr.bf16.mxu0 %v2272_v33  ;;  %v2277_v36 = vld [vmem:[%s2801_s5 + $0x30] sm:$0xff]   ;;  %v2279_v38 = vld [vmem:[%s2803_s7] sm:$0xff]   ;;  %v1378_v39 = vld [vmem:[%s2804_s9 + $0x8] sm:$0xff] }
 0x125   :  { %611 = vst [vmem:[#allocation2 + $0xc] sm:$0xf] %v610_v45  ;;  %v603_v52 = vsel %vm2439_vm8, %v568_v40, %v602_v37  ;;  %v576_v53 = vor.u32 %v574_v43, %v573_v42  ;;  %v578_v54 = vrot.slane %v573_v42, 4  ;;  %v2278_v37 = vld [vmem:[%s2801_s5 + $0x38] sm:$0xff]   ;;  %v1379_v40 = vld [vmem:[%s2804_s9 + $0x10] sm:$0xff]  ;;  %v1382_v45 = vld [vmem:[%s2804_s9 + $0x28] sm:$0xff] }
 0x126   :  { %604 = vst [vmem:[#allocation2] sm:$0xf] %v603_v52  ;;  %v594_v55 = vsel %vm2424_vm7, %v586_v44, %v593_v46  ;;  %v614_v56 = vsel %vm2393_vm2, %v595_v47, %v613_v41  ;;  %v2149_v41 = vpack.c.bf16 %v1378_v39, %v1377_v63  ;;  %v1380_v42 = vld [vmem:[%s2804_s9 + $0x18] sm:$0xff]  ;;  %v1381_v44 = vld [vmem:[%s2804_s9 + $0x20] sm:$0xff]  ;;  %v1383_v47 = vld [vmem:[%s2804_s9 + $0x30] sm:$0xff] }
 0x127   :  { %612 = vst [vmem:[#allocation2 + $0x10] sm:$0xf] %v594_v55  ;;  %615 = vst [vmem:[#allocation2 + $0x14] sm:$0x1] %v614_v56  ;;  %v577_v57 = vsel %vm2424_vm7, %v569_v51, %v576_v53  ;;  %v607_v58 = vsel %vm2393_vm2, %v578_v54, %v606_v48  ;;  %2004 = vmatpush3.bf16.msra.mxu1 %v2254_v31  ;;  %2064 = vmatpush3.bf16.msra.mxu0 %v2272_v33  ;;  %v1384_v48 = vld [vmem:[%s2804_s9 + $0x38] sm:$0xff]  ;;  %v1386_v51 = vld [vmem:[%s2804_s9 + $0x48] sm:$0xff] }
 0x128   :  { %605 = vst [vmem:[#allocation2 + $0x4] sm:$0xf] %v577_v57  ;;  %608 = vst [vmem:[#allocation2 + $0x8] sm:$0x1] %v607_v58  ;;  %2005 = vmatprep.subr.bf16.mxu1 %v2255_v49  ;;  %2065 = vmatprep.subr.bf16.mxu0 %v2273_v50  ;;  %v2153_v43 = vpack.c.bf16 %v1380_v42, %v1379_v40  ;;  %v2157_v46 = vpack.c.bf16 %v1382_v45, %v1381_v44  ;;  %v1387_v53 = vld [vmem:[%s2804_s9 + $0x50] sm:$0xff]  ;;  %v1388_v54 = vld [vmem:[%s2804_s9 + $0x58] sm:$0xff] }
 0x129   :  { %v2169_v55 = vpack.c.bf16 %v1388_v54, %v1387_v53  ;;  %v1389_v56 = vld [vmem:[%s2804_s9 + $0x60] sm:$0xff]  ;;  %v1390_v57 = vld [vmem:[%s2804_s9 + $0x68] sm:$0xff] }
 0x12a   :  { %v2173_v58 = vpack.c.bf16 %v1390_v57, %v1389_v56 }
 0x12b   :  { %2006 = vmatpush3.bf16.msra.mxu1 %v2255_v49  ;;  %2066 = vmatpush3.bf16.msra.mxu0 %v2273_v50  ;;  %v2161_v49 = vpack.c.bf16 %v1384_v48, %v1383_v47  ;;  %v1385_v50 = vld [vmem:[%s2804_s9 + $0x40] sm:$0xff] }
 0x12c   :  { %2007 = vmatprep.subr.bf16.mxu1 %v2256_v32  ;;  %2067 = vmatprep.subr.bf16.mxu0 %v2274_v59  ;;  %v862_v31 = vld [vmem:[#allocation2 + $0xc] sm:$0xe]  ;;  %v2165_v52 = vpack.c.bf16 %v1386_v51, %v1385_v50 }
 0x12d   :  { %v859_v7 = vld [vmem:[#allocation2] sm:$0xe]  ;;  %v1738_v34 = vrot.slane %v862_v31, 9 }
 0x12e   :  { %v1737_v10 = vrot.slane %v859_v7, 9  ;;  %v2262_v12 = vld [vmem:[#allocation2 + $0xc] sm:$0xff]   ;;  %v864_v28 = vld [vmem:[#allocation2 + $0x14] sm:$0x1]  ;;  %v2282_v7 = vld [vmem:[%s2803_s7 + $0x18] sm:$0xff]  }
 0x12f   :  { %2008 = vmatpush3.bf16.msra.mxu1 %v2256_v32  ;;  %v2258_v60 = vld [vmem:[#allocation2] sm:$0xff]   ;;  %2068 = vmatpush3.bf16.msra.mxu0 %v2274_v59  ;;  %v861_v4 = vld [vmem:[#allocation2 + $0x8] sm:$0x1]  ;;  %v863_v21 = vld [vmem:[#allocation2 + $0x10] sm:$0xf]  ;;  %v883_v33 = vrot.slane %v864_v28, 5 }
 0x130   :  { %2009 = vmatprep.subr.bf16.mxu1 %v2257_v6  ;;  %2069 = vmatprep.subr.bf16.mxu0 %v2275_v26  ;;  %v860_v0 = vld [vmem:[#allocation2 + $0x4] sm:$0xf]  ;;  %v876_v9 = vrot.slane %v861_v4, 5  ;;  %v880_v23 = vrot.slane %v863_v21, 5  ;;  %v1765_v32 = vld [vmem:[%s2805_s4] ss:$0 sm:$0xff] }
 0x131   :  { %2017 = vmatprep.mubr.bf16.mxu1 %v2258_v60  ;;  %v873_v2 = vrot.slane %v860_v0, 5  ;;  %v2280_v4 = vld [vmem:[%s2803_s7 + $0x8] sm:$0xff]  }
 0x132   :  { %v882_v29 = vrot.slane %v880_v23, 4  ;;  %v881_v30 = vsel %vm2476_vm11, %v1738_v34, %v880_v23  ;;  %v1489_v23 = vld [vmem:[%s2807_s11] sm:$0xff] }
 0x133   :  { %2010 = vmatpush3.bf16.msra.mxu1 %v2257_v6  ;;  %2070 = vmatpush3.bf16.msra.mxu0 %v2275_v26  ;;  %v875_v5 = vrot.slane %v873_v2, 4  ;;  %v874_v13 = vsel %vm2476_vm11, %v1737_v10, %v873_v2  ;;  %v2286_v10 = vld [vmem:[%s2803_s7 + $0x38] sm:$0xff]  }
 0x134   :  { %2011 = vmatprep.subr.bf16.mxu1 %v2259_v61  ;;  %2071 = vmatprep.subr.bf16.mxu0 %v2276_v62  ;;  %v884_v25 = vsel %vm2476_vm11, %v882_v29, %v883_v33  ;;  %v1791_v29 = vld [vmem:[%s2808_s10] ss:$0 sm:$0xff] }
 0x135   :  { %v877_v11 = vsel %vm2476_vm11, %v875_v5, %v876_v9  ;;  %v1756_v35 = vcombine.low %v881_v30, %v884_v25  ;;  %v2281_v5 = vld [vmem:[%s2803_s7 + $0x10] sm:$0xff]  }
 0x136   :  { %v1755_v15 = vcombine.low %v874_v13, %v877_v11  ;;  %v2285_v9 = vld [vmem:[%s2803_s7 + $0x30] sm:$0xff]  }
 0x137   :  { %2012 = vmatpush3.bf16.msra.mxu1 %v2259_v61  ;;  %2072 = vmatpush3.bf16.msra.mxu0 %v2276_v62  ;;  %v1391_v11 = vld [vmem:[%s2804_s9 + $0x70] sm:$0xff] }
 0x138   :  { %2013 = vmatprep.subr.bf16.mxu1 %v2260_v1  ;;  %2073 = vmatprep.subr.bf16.mxu0 %v2277_v36 }
 0x13b   :  { %2014 = vmatpush3.bf16.msra.mxu1 %v2260_v1  ;;  %2074 = vmatpush3.bf16.msra.mxu0 %v2277_v36 }
 0x13c   :  { %2015 = vmatprep.subr.bf16.mxu1 %v2261_v3  ;;  %2075 = vmatprep.subr.bf16.mxu0 %v2278_v37 }
 0x13f   :  { %2016 = vmatpush3.bf16.msra.mxu1 %v2261_v3  ;;  %2076 = vmatpush3.bf16.msra.mxu0 %v2278_v37 }
 0x140   :  { %2021 = vmatprep.subr.bf16.mxu1 %v2263_v8  ;;  %2081 = vmatprep.subr.bf16.mxu0 %v2279_v38 }
 0x142   :  { %2018 = vmatmul.mubr.bf16.vlgmr.msra.gmra.mrb[4].mxu1 %v2262_v12  ;;  %v1392_v12 = vld [vmem:[%s2804_s9 + $0x78] sm:$0xff] }
 0x143   :  { %2022 = vmatpush3.bf16.msra.mxu1 %v2263_v8  ;;  %2037 = vmatprep.mubr.bf16.mxu1 %v1755_v15  ;;  %v2283_v8 = vld [vmem:[%s2803_s7 + $0x20] sm:$0xff]   ;;  %v2177_v13 = vpack.c.bf16 %v1392_v12, %v1391_v11  ;;  %v2305_v12 = vld [vmem:[%s2798_s0 + $0x18] sm:$0xff] }
 0x144   :  { %2023 = vmatprep.subr.bf16.mxu1 %v2264_v14 }
 0x147   :  { %2024 = vmatpush3.bf16.msra.mxu1 %v2264_v14  ;;  %v1790_v14 = vld [vmem:[%s2806_s8] ss:$0 sm:$0xff] }
 0x148   :  { %2025 = vmatprep.subr.bf16.mxu1 %v2265_v16 }
 0x14b   :  { %2026 = vmatpush3.bf16.msra.mxu1 %v2265_v16 }
 0x14c   :  { %2027 = vmatprep.subr.bf16.mxu1 %v2266_v18 }
 0x14f   :  { %2028 = vmatpush3.bf16.msra.mxu1 %v2266_v18 }
 0x150   :  { %2029 = vmatprep.subr.bf16.mxu1 %v2267_v19 }
 0x153   :  { %2030 = vmatpush3.bf16.msra.mxu1 %v2267_v19 }
 0x154   :  { %2031 = vmatprep.subr.bf16.mxu1 %v2268_v20 }
 0x157   :  { %2032 = vmatpush3.bf16.msra.mxu1 %v2268_v20 }
 0x158   :  { %2033 = vmatprep.subr.bf16.mxu1 %v2269_v22 }
 0x15b   :  { %2034 = vmatpush3.bf16.msra.mxu1 %v2269_v22 }
 0x15c   :  { %2035 = vmatprep.subr.bf16.mxu1 %v2270_v27 }
 0x15f   :  { %2036 = vmatpush3.bf16.msra.mxu1 %v2270_v27  ;;  %v1490_v27 = vld [vmem:[%s2807_s11 + $0x8] sm:$0xff] }
 0x160   :  { %2150 = vmatprep.subr.bf16.mxu1 %v2149_v41  ;;  %v2181_v28 = vpack.c.bf16 %v1490_v27, %v1489_v23 }
 0x162   :  { %2038 = vmatmul.mubr.bf16.vlgmr.msra.gmra.mrb[4].mxu1 %v1756_v35 }
 0x163   :  { %2152 = vmatpush3.bf16.msra.mxu1 %v2149_v41  ;;  %v1792_v41 = vld [vmem:[%s2809_s12] ss:$0 sm:$0xff] }
 0x164   :  { %2154 = vmatprep.subr.bf16.mxu1 %v2153_v43 }
 0x167   :  { %2156 = vmatpush3.bf16.msra.mxu1 %v2153_v43 }
 0x168   :  { %2158 = vmatprep.subr.bf16.mxu1 %v2157_v46 }
 0x16b   :  { %2160 = vmatpush3.bf16.msra.mxu1 %v2157_v46 }
 0x16c   :  { %2162 = vmatprep.subr.bf16.mxu1 %v2161_v49 }
 0x16f   :  { %2164 = vmatpush3.bf16.msra.mxu1 %v2161_v49 }
 0x170   :  { %2166 = vmatprep.subr.bf16.mxu1 %v2165_v52 }
 0x173   :  { %2168 = vmatpush3.bf16.msra.mxu1 %v2165_v52 }
 0x174   :  { %2170 = vmatprep.subr.bf16.mxu1 %v2169_v55 }
 0x177   :  { %2172 = vmatpush3.bf16.msra.mxu1 %v2169_v55 }
 0x178   :  { %2174 = vmatprep.subr.bf16.mxu1 %v2173_v58 }
 0x17b   :  { %2176 = vmatpush3.bf16.msra.mxu1 %v2173_v58 }
 0x17c   :  { %2178 = vmatprep.subr.bf16.mxu1 %v2177_v13 }
 0x17f   :  { %2180 = vmatpush3.bf16.msra.mxu1 %v2177_v13 }
 0x180   :  { %2185 = vmatprep.subr.bf16.mxu1 %v2181_v28 }
 0x235   :  { %v2039_v59 = vpop.f32.mrb[4].mxu1 }
 0x236   :  { %v992_v6 = vpop.f32.mrb[5].mxu1  ;;  %v1019_v60 = vadd.f32 %v2039_v59, %v1765_v32 }
 0x237   :  { %v2040_v26 = vpop.f32.mrb[6].mxu1  ;;  %v1017_v0 = vadd.f32 %v1765_v32, %v992_v6 }
 0x238   :  { %v1020_v61 = vadd.f32 %v2040_v26, %v1765_v32  ;;  %v995_v62 = vpop.f32.mrb[7].mxu1 }
 0x239   :  { %v1018_v1 = vadd.f32 %v1765_v32, %v995_v62 }
 0x23a   :  { %v1022_v2 = vpack.c.bf16 %v1020_v61, %v1019_v60 }
 0x23b   :  { %v1021_v3 = vpack.c.bf16 %v1018_v1, %v1017_v0 }
 0x23d   :  { %2077 = vmatprep.mubr.bf16.mxu0 %v1021_v3 }
 0x23e   :  { %2078 = vmatmul.mubr.bf16.vlgmr.msra.gmra.mrb[4].mxu0 %v1022_v2 }
 0x23f   :  { %2082 = vmatpush3.bf16.msra.mxu0 %v2279_v38  ;;  %2097 = vmatprep.mubr.bf16.mxu0 %v2409_v17  ;;  %v2284_v17 = vld [vmem:[%s2803_s7 + $0x28] sm:$0xff]  }
 0x240   :  { %2083 = vmatprep.subr.bf16.mxu0 %v2280_v4 }
 0x243   :  { %2084 = vmatpush3.bf16.msra.mxu0 %v2280_v4  ;;  %v2303_v4 = vld [vmem:[%s2798_s0 + $0x8] sm:$0xff] }
 0x244   :  { %2085 = vmatprep.subr.bf16.mxu0 %v2281_v5 }
 0x247   :  { %2086 = vmatpush3.bf16.msra.mxu0 %v2281_v5 }
 0x248   :  { %2087 = vmatprep.subr.bf16.mxu0 %v2282_v7 }
 0x24b   :  { %2088 = vmatpush3.bf16.msra.mxu0 %v2282_v7 }
 0x24c   :  { %2089 = vmatprep.subr.bf16.mxu0 %v2283_v8 }
 0x24f   :  { %2090 = vmatpush3.bf16.msra.mxu0 %v2283_v8  ;;  %v2304_v8 = vld [vmem:[%s2798_s0] sm:$0xff] }
 0x250   :  { %2091 = vmatprep.subr.bf16.mxu0 %v2284_v17 }
 0x253   :  { %2092 = vmatpush3.bf16.msra.mxu0 %v2284_v17 }
 0x254   :  { %2093 = vmatprep.subr.bf16.mxu0 %v2285_v9 }
 0x257   :  { %2094 = vmatpush3.bf16.msra.mxu0 %v2285_v9 }
 0x258   :  { %2095 = vmatprep.subr.bf16.mxu0 %v2286_v10 }
 0x25b   :  { %2096 = vmatpush3.bf16.msra.mxu0 %v2286_v10 }
 0x25c   :  { %2182 = vmatprep.subr.bf16.mxu0 %v2181_v28 }
 0x25e   :  { %2098 = vmatmul.mubr.bf16.vlgmr.msra.gmra.mrb[4].mxu0 %v2506_v24 }
 0x25f   :  { %2184 = vmatpush3.bf16.msra.mxu0 %v2181_v28 }
 0x331   :  { %v2099_v15 = vpop.f32.mrb[4].mxu0 }
 0x332   :  { %v1347_v16 = vpop.f32.mrb[5].mxu0  ;;  %v2750_v21 = vadd.f32 %v2099_v15, %v1790_v14 }
 0x333   :  { %v2745_v18 = vadd.f32 %v1790_v14, %v1347_v16  ;;  %v2100_v24 = vpop.f32.mrb[6].mxu0 }
 0x334   :  { %v1350_v19 = vpop.f32.mrb[7].mxu0  ;;  %v2754_v22 = vadd.f32 %v2100_v24, %v1790_v14 }
 0x335   :  { %v2747_v20 = vadd.f32 %v1790_v14, %v1350_v19  ;;  %2133 = vmatprep.mubr.f32.mxu1 %v2745_v18  ;;  %v2306_v14 = vld [vmem:[%s2798_s0 + $0x10] sm:$0xff] }
 0x337   :  { %2134 = vmatmul.mubr.f32.vlgmr.msra.gmra.mrb[8].mxu1 %v2747_v20 }
 0x338   :  { %2136 = vmatprep.mubr.f32.mxu1 %v2750_v21  ;;  %2186 = vmatpush3.bf16.msra.mxu1 %v2181_v28 }
 0x33b   :  { %2137 = vmatmul.mubr.f32.gmra.mrb[10].mxu1 %v2754_v22 }
 0x40a   :  { %v2135_v31 = vpop.f32.mrb[8].mxu1 }
 0x40b   :  { %v1472_v33 = vadd.f32 %v2135_v31, %v1791_v29  ;;  %v1466_v34 = vpop.f32.mrb[9].mxu1 }
 0x40c   :  { %v1467_v25 = vadd.f32 %v1791_v29, %v1466_v34 }
 0x40d   :  { %v1486_v36 = vmax.f32 %v1472_v33, 0.0 }
 0x40e   :  { %v1485_v30 = vmax.f32 %v1467_v25, 0.0  ;;  %v2138_v35 = vpop.f32.mrb[10].mxu1 }
 0x40f   :  { %v1482_v37 = vadd.f32 %v2138_v35, %v1791_v29  ;;  %v1476_v38 = vpop.f32.mrb[11].mxu1 }
 0x410   :  { %v1477_v63 = vadd.f32 %v1791_v29, %v1476_v38  ;;  %2143 = vmatprep.mubr.msk.f32.mxu0 %vm1498_vm12, %v1485_v30 }
 0x411   :  { %2144 = vmatmul.mubr.msk.f32.vlgmr.msra.gmra.mrb[8].mxu0 %vm1498_vm12, %v1486_v36  ;;  %v1488_v40 = vmax.f32 %v1482_v37, 0.0 }
 0x412   :  { %v1487_v39 = vmax.f32 %v1477_v63, 0.0 }
 0x414   :  { %2146 = vmatprep.mubr.msk.f32.mxu1 %vm1498_vm12, %v1487_v39 }
 0x415   :  { %2147 = vmatmul.mubr.msk.f32.vlgmr.msra.gmra.mrb[12].mxu1 %vm1498_vm12, %v1488_v40 }
 0x4e4   :  { %v2145_v42 = vpop.f32.mrb[8].mxu0 }
 0x4e5   :  { %v1583_v43 = vadd.f32 %v2145_v42, %v1792_v41  ;;  %v1577_v44 = vpop.f32.mrb[9].mxu0 }
 0x4e6   :  { %v1578_v45 = vadd.f32 %v1792_v41, %v1577_v44 }
 0x4e7   :  { %v1597_v46 = vsub.f32 0.0, %v1583_v43 }
 0x4e8   :  { %v1596_v47 = vsub.f32 0.0, %v1578_v45  ;;  %v2148_v48 = vpop.f32.mrb[12].mxu1 }
 0x4e9   :  { %v1602_v49 = vmul.f32 1.442695, %v1597_v46  ;;  %v1593_v50 = vadd.f32 %v2148_v48, %v1792_v41  ;;  %v1587_v51 = vpop.f32.mrb[13].mxu1 }
 0x4ea   :  { %v1600_v52 = vmul.f32 1.442695, %v1596_v47  ;;  %v1588_v53 = vadd.f32 %v1792_v41, %v1587_v51 }
 0x4eb   :  { %2287 = vpow2.f32 %v1602_v49  ;;  %v1599_v54 = vsub.f32 0.0, %v1593_v50 }
 0x4ec   :  { %2289 = vpow2.f32 %v1600_v52  ;;  %v1598_v55 = vsub.f32 0.0, %v1588_v53 }
 0x4ed   :  { %v1606_v56 = vmul.f32 1.442695, %v1599_v54 }
 0x4ee   :  { %v1604_v57 = vmul.f32 1.442695, %v1598_v55 }
 0x4ef   :  { %2291 = vpow2.f32 %v1606_v56 }
 0x4f0   :  { %2293 = vpow2.f32 %v1604_v57 }
 0x4f5   :  { %v2288_v58 = vpop.eup %2287 }
 0x4f6   :  { %v2290_v32 = vpop.eup %2289  ;;  %v1609_v59 = vadd.f32 1.0, %v2288_v58 }
 0x4f7   :  { %v1608_v6 = vadd.f32 1.0, %v2290_v32 }
 0x4f8   :  { %2295 = vrcp.f32 %v1609_v59 }
 0x4f9   :  { %v2292_v26 = vpop.eup %2291  ;;  %2297 = vrcp.f32 %v1608_v6 }
 0x4fa   :  { %v2294_v60 = vpop.eup %2293  ;;  %v1611_v61 = vadd.f32 1.0, %v2292_v26 }
 0x4fb   :  { %v1610_v62 = vadd.f32 1.0, %v2294_v60 }
 0x4fc   :  { %2299 = vrcp.f32 %v1611_v61 }
 0x4fd   :  { %2301 = vrcp.f32 %v1610_v62 }
 0x502   :  { %v2296_v0 = vpop.eup %2295 }
 0x503   :  { %v2298_v1 = vpop.eup %2297  ;;  %v1617_v2 = vmul.f32 %v2296_v0, %v2747_v20 }
 0x504   :  { %v1616_v3 = vmul.f32 %v2298_v1, %v2745_v18 }
 0x505   :  { %v1621_v5 = vadd.f32 %v2303_v4, %v1617_v2 }
 0x506   :  { %v2300_v7 = vpop.eup %2299  ;;  %v1620_v17 = vadd.f32 %v2304_v8, %v1616_v3 }
 0x507   :  { %v2302_v9 = vpop.eup %2301  ;;  %1625 = vst [vmem:[%s2810_s13 + $0x8] sm:$0xff] %v1621_v5  ;;  %v1619_v10 = vmul.f32 %v2300_v7, %v2754_v22 }
 0x508   :  { %1624 = vst [vmem:[%s2810_s13] sm:$0xff] %v1620_v17  ;;  %v1618_v11 = vmul.f32 %v2302_v9, %v2750_v21 }
 0x509   :  { %v1623_v13 = vadd.f32 %v2305_v12, %v1619_v10 }
 0x50a   :  { %v1622_v15 = vadd.f32 %v2306_v14, %v1618_v11 }
 0x50b   :  { %1627 = vst [vmem:[%s2810_s13 + $0x18] sm:$0xff] %v1623_v13 }
 0x50c   :  { %1626 = vst [vmem:[%s2810_s13 + $0x10] sm:$0xff] %v1622_v15 }

</bundles_post_ra>
